<compile_context>
chip_gen: v7x
topology: tpu7x:2x2x1
jax: 0.10.0
libtpu: 0.0.40
codegen_flags: <defaults>
</compile_context>

<pallas_src>
import functools

import jax
import jax.numpy as jnp
from jax.experimental import pallas as pl
from jax.experimental.pallas import tpu as pltpu

HIDDEN1 = 400
HIDDEN2 = 300
LANE = 128


def _round_up(x, m):
    return (x + m - 1) // m * m


def actor_kernel(x_ref, w1_ref, b1_ref, w2_ref, b2_ref, w3_ref, b3_ref,
                 o_ref, h1_ref, h2_ref):
    # Layer 1: Linear(obs -> 512pad) + ReLU. MXU matmul, f32 accumulate; the
    # bf16 cast is fused into the scratch store (half the st/ld bytes).
    h1 = jnp.dot(x_ref[...], w1_ref[...], preferred_element_type=jnp.float32)
    h1_ref[...] = jnp.maximum(h1 + b1_ref[...], 0.0).astype(h1_ref.dtype)

    # Layer 2: Linear(512pad -> 384pad) + ReLU.
    h2 = jnp.dot(h1_ref[...], w2_ref[...], preferred_element_type=jnp.float32)
    h2_ref[...] = jnp.maximum(h2 + b2_ref[...], 0.0).astype(h2_ref.dtype)

    # Layer 3: Linear(384pad -> 128pad) + tanh (EUP). Output lane dim padded to
    # 128 -> unmasked, lane-dense stores.
    h3 = jnp.dot(h2_ref[...], w3_ref[...], preferred_element_type=jnp.float32)
    o_ref[...] = jnp.tanh(h3 + b3_ref[...])


def _pad2(a, rows, cols):
    r, c = a.shape
    if r != rows or c != cols:
        a = jnp.pad(a, ((0, rows - r), (0, cols - c)))
    return a


@functools.partial(jax.jit, static_argnames=("tile_m", "param_dtype"))
def actor_forward(x, w1, b1, w2, b2, w3, b3, *, tile_m=1024,
                  param_dtype=jnp.bfloat16):
    batch, obs = x.shape
    action = w3.shape[1]

    # Zero-padded (lane-multiple) hidden / output widths.
    h1p = _round_up(HIDDEN1, LANE)          # 512
    h2p = _round_up(HIDDEN2, LANE)          # 384
    actp = _round_up(action, LANE)          # e.g. 128 for action=8

    # Batch tile: multiple of 8 (sublane). No jnp.pad of x — Pallas handles the
    # partial last block (garbage rows are row-independent, masked on write and
    # sliced off below).
    rows8 = _round_up(batch, 8)
    tm = min(tile_m, rows8)
    if rows8 <= tm and rows8 >= 16:
        # Guarantee >=2 grid steps so the "parallel" batch axis can shard across
        # both TensorCores on v7x (harmless on v5e/v6e: one extra cheap step).
        tm = _round_up(pl.cdiv(rows8, 2), 8)
    grid_m = pl.cdiv(batch, tm)

    xp = x.astype(param_dtype)
    w1c = _pad2(w1.astype(param_dtype), obs, h1p)
    w2c = _pad2(w2.astype(param_dtype), h1p, h2p)
    w3c = _pad2(w3.astype(param_dtype), h2p, actp)
    # Biases arrive in nn.Linear layout (N,) -> reshape to (1, N), keep f32.
    b1c = _pad2(b1.reshape(1, -1).astype(jnp.float32), 1, h1p)
    b2c = _pad2(b2.reshape(1, -1).astype(jnp.float32), 1, h2p)
    b3c = _pad2(b3.reshape(1, -1).astype(jnp.float32), 1, actp)

    # Advisory cost hint for the XLA scheduler.
    psize = jnp.dtype(param_dtype).itemsize
    flops = 2 * batch * (obs * h1p + h1p * h2p + h2p * actp)
    bytes_accessed = (
        xp.size * psize
        + (w1c.size + w2c.size + w3c.size) * psize
        + (b1c.size + b2c.size + b3c.size) * 4
        + batch * actp * 4
    )
    cost = pl.CostEstimate(flops=flops,
                           transcendentals=batch * actp,
                           bytes_accessed=bytes_accessed)

    const = lambda i: (0, 0)   # weights/biases: same block every step -> resident

    out = pl.pallas_call(
        actor_kernel,
        out_shape=jax.ShapeDtypeStruct((batch, actp), jnp.float32),
        grid_spec=pltpu.PrefetchScalarGridSpec(
            num_scalar_prefetch=0,
            grid=(grid_m,),
            in_specs=[
                pl.BlockSpec((tm, obs), lambda i: (i, 0)),       # x: tiled over batch
                pl.BlockSpec((obs, h1p), const),                 # w1 (resident)
                pl.BlockSpec((1, h1p), const),                   # b1 (resident)
                pl.BlockSpec((h1p, h2p), const),                 # w2 (resident)
                pl.BlockSpec((1, h2p), const),                   # b2 (resident)
                pl.BlockSpec((h2p, actp), const),                # w3 (resident)
                pl.BlockSpec((1, actp), const),                  # b3 (resident)
            ],
            out_specs=pl.BlockSpec((tm, actp), lambda i: (i, 0)),
            scratch_shapes=[
                pltpu.VMEM((tm, h1p), param_dtype),              # h1 activations (bf16)
                pltpu.VMEM((tm, h2p), param_dtype),              # h2 activations (bf16)
            ],
        ),
        compiler_params=pltpu.CompilerParams(
            dimension_semantics=("parallel",)),
        cost_estimate=cost,
    )(xp, w1c, b1c, w2c, b2c, w3c, b3c)

    return out[:batch, :action]


def init_linear(key, fan_in, fan_out):
    """PyTorch nn.Linear default init: U(-1/sqrt(fan_in), 1/sqrt(fan_in))."""
    kw, kb = jax.random.split(key)
    bound = 1.0 / jnp.sqrt(jnp.float32(fan_in))
    # stored as [in, out] so kernel does x @ W; bias in nn.Linear layout (out,)
    w = jax.random.uniform(kw, (fan_in, fan_out), jnp.float32, -bound, bound)
    b = jax.random.uniform(kb, (fan_out,), jnp.float32, -bound, bound)
    return w, b


def ref_forward_f32(x, w1, b1, w2, b2, w3, b3):
    h1 = jnp.maximum(x @ w1 + b1, 0.0)
    h2 = jnp.maximum(h1 @ w2 + b2, 0.0)
    return jnp.tanh(h2 @ w3 + b3)


if __name__ == "__main__":
    observation_size = 32
    action_size = 8
    batch = 2

    key = jax.random.PRNGKey(0)
    k_x, k_xl, k1, k2, k3 = jax.random.split(key, 5)

    x = jax.random.normal(k_x, (batch, observation_size), jnp.float32)
    w1, b1 = init_linear(k1, observation_size, 400)
    w2, b2 = init_linear(k2, 400, 300)
    w3, b3 = init_linear(k3, 300, action_size)

    # Small-batch path (single grid step, tile padded to 8 rows, masked edge block).
    out = actor_forward(x, w1, b1, w2, b2, w3, b3)
    out = jax.block_until_ready(out)
    ref = ref_forward_f32(x, w1, b1, w2, b2, w3, b3)
    assert out.shape == (batch, action_size)
    # bf16 weights/activations -> compare against f32 reference with looser tolerance.
    assert jnp.allclose(out, ref, atol=2e-2, rtol=2e-2), (
        float(jnp.max(jnp.abs(out - ref))))

    # Larger batch: exercises multiple grid steps (>=2 for megacore) + partial tile.
    xl = jax.random.normal(k_xl, (300, observation_size), jnp.float32)
    out_l = actor_forward(xl, w1, b1, w2, b2, w3, b3)
    out_l = jax.block_until_ready(out_l)
    ref_l = ref_forward_f32(xl, w1, b1, w2, b2, w3, b3)
    assert out_l.shape == (300, action_size)
    assert jnp.allclose(out_l, ref_l, atol=2e-2, rtol=2e-2), (
        float(jnp.max(jnp.abs(out_l - ref_l))))

    print("KERNEL_OK")
</pallas_src>

<mosaic_0001>
module attributes {stable_mosaic.version = 11 : i64} {
  func.func @actor_kernel(%arg0: i32, %arg1: memref<8x32xbf16, #tpu.memory_space<vmem>>, %arg2: memref<32x512xbf16, #tpu.memory_space<vmem>>, %arg3: memref<1x512xf32, #tpu.memory_space<vmem>>, %arg4: memref<512x384xbf16, #tpu.memory_space<vmem>>, %arg5: memref<1x384xf32, #tpu.memory_space<vmem>>, %arg6: memref<384x128xbf16, #tpu.memory_space<vmem>>, %arg7: memref<1x128xf32, #tpu.memory_space<vmem>>, %arg8: memref<8x128xf32, #tpu.memory_space<vmem>>, %arg9: memref<8x512xbf16, #tpu.memory_space<vmem>>, %arg10: memref<8x384xbf16, #tpu.memory_space<vmem>>) attributes {dimension_semantics = [#tpu.dimension_semantics<parallel>], iteration_bounds = array<i64: 1>, scalar_prefetch = 0 : i64, scratch_operands = 2 : i64, tpu.core_type = #tpu.core_type<tc>, window_params = [{transform_indices = @transform_0, window_bounds = array<i64: 8, 32>}, {pipeline_mode = #tpu.pipeline_mode<synchronous>, transform_indices = @transform_1, window_bounds = array<i64: 32, 512>}, {pipeline_mode = #tpu.pipeline_mode<synchronous>, transform_indices = @transform_2, window_bounds = array<i64: 1, 512>}, {pipeline_mode = #tpu.pipeline_mode<synchronous>, transform_indices = @transform_3, window_bounds = array<i64: 512, 384>}, {pipeline_mode = #tpu.pipeline_mode<synchronous>, transform_indices = @transform_4, window_bounds = array<i64: 1, 384>}, {pipeline_mode = #tpu.pipeline_mode<synchronous>, transform_indices = @transform_5, window_bounds = array<i64: 384, 128>}, {pipeline_mode = #tpu.pipeline_mode<synchronous>, transform_indices = @transform_6, window_bounds = array<i64: 1, 128>}, {transform_indices = @transform_7, window_bounds = array<i64: 8, 128>}]} {
    %c0 = arith.constant 0 : index
    %c0_0 = arith.constant 0 : index
    %0 = vector.load %arg1[%c0, %c0_0] : memref<8x32xbf16, #tpu.memory_space<vmem>>, vector<8x32xbf16>
    %c0_1 = arith.constant 0 : index
    %c0_2 = arith.constant 0 : index
    %1 = vector.load %arg2[%c0_1, %c0_2] : memref<32x512xbf16, #tpu.memory_space<vmem>>, vector<32x512xbf16>
    %cst = arith.constant dense<0.000000e+00> : vector<8x512xf32>
    %2 = tpu.matmul %0, %1, %cst {dimension_numbers = #tpu.dot_dimension_numbers<[1], [0], [0], [1], [0, 0, 1, 1], [], []>} : vector<8x32xbf16>, vector<32x512xbf16>, vector<8x512xf32> -> vector<8x512xf32>
    %c0_3 = arith.constant 0 : index
    %c0_4 = arith.constant 0 : index
    %3 = vector.load %arg3[%c0_3, %c0_4] : memref<1x512xf32, #tpu.memory_space<vmem>>, vector<1x512xf32>
    %4 = vector.broadcast %3 : vector<1x512xf32> to vector<8x512xf32>
    %5 = arith.addf %2, %4 : vector<8x512xf32>
    %cst_5 = arith.constant 0.000000e+00 : f32
    %6 = vector.broadcast %cst_5 : f32 to vector<8x512xf32>
    %7 = arith.maximumf %5, %6 : vector<8x512xf32>
    %8 = arith.truncf %7 : vector<8x512xf32> to vector<8x512xbf16>
    %c0_6 = arith.constant 0 : index
    %c0_7 = arith.constant 0 : index
    %9 = vector.load %arg9[%c0_6, %c0_7] : memref<8x512xbf16, #tpu.memory_space<vmem>>, vector<8x512xbf16>
    tpu.vector_store %arg9[%c0_6, %c0_7], %8 {strides = array<i32>} : memref<8x512xbf16, #tpu.memory_space<vmem>>, vector<8x512xbf16>,
    %c0_8 = arith.constant 0 : index
    %c0_9 = arith.constant 0 : index
    %10 = vector.load %arg9[%c0_8, %c0_9] : memref<8x512xbf16, #tpu.memory_space<vmem>>, vector<8x512xbf16>
    %c0_10 = arith.constant 0 : index
    %c0_11 = arith.constant 0 : index
    %11 = vector.load %arg4[%c0_10, %c0_11] : memref<512x384xbf16, #tpu.memory_space<vmem>>, vector<512x384xbf16>
    %cst_12 = arith.constant dense<0.000000e+00> : vector<8x384xf32>
    %12 = tpu.matmul %10, %11, %cst_12 {dimension_numbers = #tpu.dot_dimension_numbers<[1], [0], [0], [1], [0, 0, 1, 1], [], []>} : vector<8x512xbf16>, vector<512x384xbf16>, vector<8x384xf32> -> vector<8x384xf32>
    %c0_13 = arith.constant 0 : index
    %c0_14 = arith.constant 0 : index
    %13 = vector.load %arg5[%c0_13, %c0_14] : memref<1x384xf32, #tpu.memory_space<vmem>>, vector<1x384xf32>
    %14 = vector.broadcast %13 : vector<1x384xf32> to vector<8x384xf32>
    %15 = arith.addf %12, %14 : vector<8x384xf32>
    %cst_15 = arith.constant 0.000000e+00 : f32
    %16 = vector.broadcast %cst_15 : f32 to vector<8x384xf32>
    %17 = arith.maximumf %15, %16 : vector<8x384xf32>
    %18 = arith.truncf %17 : vector<8x384xf32> to vector<8x384xbf16>
    %c0_16 = arith.constant 0 : index
    %c0_17 = arith.constant 0 : index
    %19 = vector.load %arg10[%c0_16, %c0_17] : memref<8x384xbf16, #tpu.memory_space<vmem>>, vector<8x384xbf16>
    tpu.vector_store %arg10[%c0_16, %c0_17], %18 {strides = array<i32>} : memref<8x384xbf16, #tpu.memory_space<vmem>>, vector<8x384xbf16>,
    %c0_18 = arith.constant 0 : index
    %c0_19 = arith.constant 0 : index
    %20 = vector.load %arg10[%c0_18, %c0_19] : memref<8x384xbf16, #tpu.memory_space<vmem>>, vector<8x384xbf16>
    %c0_20 = arith.constant 0 : index
    %c0_21 = arith.constant 0 : index
    %21 = vector.load %arg6[%c0_20, %c0_21] : memref<384x128xbf16, #tpu.memory_space<vmem>>, vector<384x128xbf16>
    %cst_22 = arith.constant dense<0.000000e+00> : vector<8x128xf32>
    %22 = tpu.matmul %20, %21, %cst_22 {dimension_numbers = #tpu.dot_dimension_numbers<[1], [0], [0], [1], [0, 0, 1, 1], [], []>} : vector<8x384xbf16>, vector<384x128xbf16>, vector<8x128xf32> -> vector<8x128xf32>
    %c0_23 = arith.constant 0 : index
    %c0_24 = arith.constant 0 : index
    %23 = vector.load %arg7[%c0_23, %c0_24] : memref<1x128xf32, #tpu.memory_space<vmem>>, vector<1x128xf32>
    %24 = vector.broadcast %23 : vector<1x128xf32> to vector<8x128xf32>
    %25 = arith.addf %22, %24 : vector<8x128xf32>
    %26 = math.tanh %25 : vector<8x128xf32>
    %c0_25 = arith.constant 0 : index
    %c0_26 = arith.constant 0 : index
    %27 = vector.load %arg8[%c0_25, %c0_26] : memref<8x128xf32, #tpu.memory_space<vmem>>, vector<8x128xf32>
    tpu.vector_store %arg8[%c0_25, %c0_26], %26 {strides = array<i32>} : memref<8x128xf32, #tpu.memory_space<vmem>>, vector<8x128xf32>,
    return
  }
  func.func @transform_0(%arg0: i32) -> (i32, i32) {
    %c0_i32 = arith.constant 0 : i32
    %c0_i32_0 = arith.constant 0 : i32
    return %arg0, %c0_i32 : i32, i32
  }
  func.func @transform_1(%arg0: i32) -> (i32, i32) {
    %c0_i32 = arith.constant 0 : i32
    %c0_i32_0 = arith.constant 0 : i32
    %c0_i32_1 = arith.constant 0 : i32
    return %c0_i32, %c0_i32_0 : i32, i32
  }
  func.func @transform_2(%arg0: i32) -> (i32, i32) {
    %c0_i32 = arith.constant 0 : i32
    %c0_i32_0 = arith.constant 0 : i32
    %c0_i32_1 = arith.constant 0 : i32
    return %c0_i32, %c0_i32_0 : i32, i32
  }
  func.func @transform_3(%arg0: i32) -> (i32, i32) {
    %c0_i32 = arith.constant 0 : i32
    %c0_i32_0 = arith.constant 0 : i32
    %c0_i32_1 = arith.constant 0 : i32
    return %c0_i32, %c0_i32_0 : i32, i32
  }
  func.func @transform_4(%arg0: i32) -> (i32, i32) {
    %c0_i32 = arith.constant 0 : i32
    %c0_i32_0 = arith.constant 0 : i32
    %c0_i32_1 = arith.constant 0 : i32
    return %c0_i32, %c0_i32_0 : i32, i32
  }
  func.func @transform_5(%arg0: i32) -> (i32, i32) {
    %c0_i32 = arith.constant 0 : i32
    %c0_i32_0 = arith.constant 0 : i32
    %c0_i32_1 = arith.constant 0 : i32
    return %c0_i32, %c0_i32_0 : i32, i32
  }
  func.func @transform_6(%arg0: i32) -> (i32, i32) {
    %c0_i32 = arith.constant 0 : i32
    %c0_i32_0 = arith.constant 0 : i32
    %c0_i32_1 = arith.constant 0 : i32
    return %c0_i32, %c0_i32_0 : i32, i32
  }
  func.func @transform_7(%arg0: i32) -> (i32, i32) {
    %c0_i32 = arith.constant 0 : i32
    %c0_i32_0 = arith.constant 0 : i32
    return %arg0, %c0_i32 : i32, i32
  }
}

</mosaic_0001>

<bundles_post_ra>
// kernel: actor_forward.1
= control target key start
LH: loop header
LB: loop body
LE: loop exit
PB: predicated region body
PF: predicated region fallthrough
CT: control target
= control target key end

     0   :  { %12 = vsyncpa [#allocation5], 0  ;;  %v1852_v2 = vmov 0   ;;  %v42_v3 = vlaneseq  ;;  %v1853_v11 = vmov 1966171168   ;;  %vm130_vm0 = vcmask 261120   ;;  %s2344_s0 = inlined_call_operand.vmem [shape: bf16[2,32], index: 0, kind: input, shape index: {}]   ;;  %s2345_s1 = inlined_call_operand.vmem [shape: bf16[32,512], index: 1, kind: input, shape index: {}]   ;;  %s2346_s2 = inlined_call_operand.vmem [shape: f32[1,512], index: 2, kind: input, shape index: {}]   ;;  %s2347_s3 = inlined_call_operand.vmem [shape: bf16[512,384], index: 3, kind: input, shape index: {}]   ;;  %s2348_s4 = inlined_call_operand.vmem [shape: f32[1,384], index: 4, kind: input, shape index: {}]   ;;  %s2349_s5 = inlined_call_operand.vmem [shape: bf16[384,128], index: 5, kind: input, shape index: {}]   ;;  %s2350_s6 = inlined_call_operand.vmem [shape: f32[1,128], index: 6, kind: input, shape index: {}]   ;;  %s2351_s7 = inlined_call_operand.hbm [shape: f32[2,128], index: 7, kind: output, shape index: {}]  }
   0x1   :  { %v1659_v0 = vld [vmem:[%s2345_s1 + $0x4] ss:$16 sps:$4 sm:$0xff]   ;;  %v1661_v1 = vld [vmem:[%s2345_s1] ss:$16 sps:$4 sm:$0xff]   ;;  %166 = vmatprep.mubr.bf16.mxu0 %v1852_v2  ;;  %207 = vmatprep.mubr.bf16.mxu1 %v1852_v2  ;;  %v69_v12 = vunpack.c.l.s4 %v1853_v11  ;;  %v1665_v13 = vld [vmem:[%s2345_s1 + $0xc] ss:$16 sps:$4 sm:$0xff]  }
   0x2   :  { %v1662_v4 = vld [vmem:[%s2345_s1 + $0x24] ss:$16 sps:$4 sm:$0xff]   ;;  %v1664_v5 = vld [vmem:[%s2345_s1 + $0x20] ss:$16 sps:$4 sm:$0xff]   ;;  %134 = vmatprep.subr.bf16.mxu0 %v1659_v0  ;;  %v1923_v10 = vshrl.u32 %v42_v3, 7  ;;  %175 = vmatprep.subr.bf16.mxu1 %v1665_v13  ;;  %vm1855_vm1 = vmmov 0  }
   0x3   :  { %v28_v6 = vld [vmem:[%s2344_s0] sm:$0x1]  ;;  %v29_v7 = vld [vmem:[%s2344_s0 + $0x1] sm:$0x1]  ;;  %v30_v8 = vld [vmem:[%s2344_s0 + $0x2] sm:$0x1]  ;;  %135 = vmatpush1.bf16.msra.mxu0 %v1661_v1  ;;  %v70_v18 = vunpack.c.0.s8 %v69_v12 }
   0x4   :  { %v31_v9 = vld [vmem:[%s2344_s0 + $0x3] sm:$0x1]  ;;  %136 = vmatprep.subr.bf16.mxu0 %v1662_v4  ;;  %v1667_v14 = vld [vmem:[%s2345_s1 + $0x8] ss:$16 sps:$4 sm:$0xff]   ;;  %v1668_v15 = vld [vmem:[%s2345_s1 + $0x2c] ss:$16 sps:$4 sm:$0xff]   ;;  %v66_v16 = vcombine.low %v28_v6, %v29_v7 }
   0x5   :  { %v67_v17 = vcombine.low %v30_v8, %v31_v9  ;;  %v1670_v19 = vld [vmem:[%s2345_s1 + $0x28] ss:$16 sps:$4 sm:$0xff]   ;;  %176 = vmatpush1.bf16.msra.mxu1 %v1667_v14  ;;  %v1673_v20 = vld [vmem:[%s2347_s3 + $0x4] ss:$12 sps:$4 sm:$0xff]   ;;  %v73_v21 = vsub.s32 %v70_v18, %v1923_v10  ;;  %v1671_v25 = vld [vmem:[%s2347_s3] ss:$12 sps:$4 sm:$0xff]  }
   0x6   :  { %177 = vmatprep.subr.bf16.mxu1 %v1668_v15  ;;  %v1676_v27 = vld [vmem:[%s2347_s3 + $0x1c] ss:$12 sps:$4 sm:$0xff]   ;;  %v1674_v28 = vld [vmem:[%s2347_s3 + $0x18] ss:$12 sps:$4 sm:$0xff]   ;;  %v1679_v29 = vld [vmem:[%s2347_s3 + $0x34] ss:$12 sps:$4 sm:$0xff]  }
   0x7   :  { %137 = vmatpush1.bf16.msra.mxu0 %v1664_v5  ;;  %v74_v22 = vrot.slane %v66_v16, %v73_v21  ;;  %v81_v23 = vrot.slane %v67_v17, %v73_v21  ;;  %v1698_v30 = vld [vmem:[%s2347_s3 + $0xc8] ss:$12 sps:$4 sm:$0xff]   ;;  %v1677_v32 = vld [vmem:[%s2347_s3 + $0x30] ss:$12 sps:$4 sm:$0xff]   ;;  %v1682_v33 = vld [vmem:[%s2347_s3 + $0x4c] ss:$12 sps:$4 sm:$0xff]  }
   0x8   :  { %911 = vmatprep.subr.bf16.mxu0 %v1673_v20  ;;  %v1699_v31 = vld [vmem:[%s2347_s3 + $0x8] ss:$12 sps:$4 sm:$0xff]   ;;  %v1703_v34 = vld [vmem:[%s2347_s3 + $0xe0] ss:$12 sps:$4 sm:$0xff]   ;;  %v1685_v37 = vld [vmem:[%s2347_s3 + $0x64] ss:$12 sps:$4 sm:$0xff]  }
   0x9   :  { %178 = vmatpush1.bf16.msra.mxu1 %v1670_v19  ;;  %v82_v24 = vcombine.low %v74_v22, %v81_v23  ;;  %v1704_v35 = vld [vmem:[%s2347_s3 + $0x20] ss:$12 sps:$4 sm:$0xff]   ;;  %v1680_v36 = vld [vmem:[%s2347_s3 + $0x48] ss:$12 sps:$4 sm:$0xff]   ;;  %v1708_v38 = vld [vmem:[%s2347_s3 + $0xf8] ss:$12 sps:$4 sm:$0xff]  }
   0xa   :  { %1551 = vmatprep.subr.bf16.mxu1 %v1698_v30  ;;  %v1709_v39 = vld [vmem:[%s2347_s3 + $0x38] ss:$12 sps:$4 sm:$0xff]   ;;  %v1683_v40 = vld [vmem:[%s2347_s3 + $0x60] ss:$12 sps:$4 sm:$0xff]   ;;  %v1713_v41 = vld [vmem:[%s2347_s3 + $0x110] ss:$12 sps:$4 sm:$0xff]  }
   0xb   :  { %v89_v26 = vrot.slane %v82_v24, %v73_v21  ;;  %v1714_v42 = vld [vmem:[%s2347_s3 + $0x50] ss:$12 sps:$4 sm:$0xff]   ;;  %v1686_v44 = vld [vmem:[%s2347_s3 + $0x78] ss:$12 sps:$4 sm:$0xff]   ;;  %v1718_v45 = vld [vmem:[%s2347_s3 + $0x128] ss:$12 sps:$4 sm:$0xff]  }
   0xc   :  { %v1688_v43 = vld [vmem:[%s2347_s3 + $0x7c] ss:$12 sps:$4 sm:$0xff]   ;;  %v1691_v47 = vld [vmem:[%s2347_s3 + $0x94] ss:$12 sps:$4 sm:$0xff]   ;;  %v1694_v50 = vld [vmem:[%s2347_s3 + $0xac] ss:$12 sps:$4 sm:$0xff]  }
   0xd   :  { %1409 = vmatmul.mubr.msk.bf16.vlgmr.msra.gmra.mrb[0].mxu0 %vm130_vm0, %v89_v26  ;;  %1410 = vmatmul.mubr.msk.bf16.vlgmr.msra.gmra.mrb[0].mxu1 %vm130_vm0, %v89_v26  ;;  %v1719_v46 = vld [vmem:[%s2347_s3 + $0x68] ss:$12 sps:$4 sm:$0xff]   ;;  %v1689_v48 = vld [vmem:[%s2347_s3 + $0x90] ss:$12 sps:$4 sm:$0xff]   ;;  %v1723_v49 = vld [vmem:[%s2347_s3 + $0x140] ss:$12 sps:$4 sm:$0xff]  }
   0xe   :  { %912 = vmatpush1.bf16.msra.mxu0 %v1671_v25  ;;  %1552 = vmatpush3.bf16.msra.mxu1 %v1699_v31  ;;  %v1724_v51 = vld [vmem:[%s2347_s3 + $0x80] ss:$12 sps:$4 sm:$0xff]   ;;  %v1692_v52 = vld [vmem:[%s2347_s3 + $0xa8] ss:$12 sps:$4 sm:$0xff]   ;;  %v1697_v53 = vld [vmem:[%s2347_s3 + $0xc4] ss:$12 sps:$4 sm:$0xff]  }
   0xf   :  { %913 = vmatprep.subr.bf16.mxu0 %v1676_v27  ;;  %1553 = vmatprep.subr.bf16.mxu1 %v1703_v34  ;;  %v1695_v54 = vld [vmem:[%s2347_s3 + $0xc0] ss:$12 sps:$4 sm:$0xff]   ;;  %v1702_v55 = vld [vmem:[%s2347_s3 + $0xdc] ss:$12 sps:$4 sm:$0xff]   ;;  %v1700_v56 = vld [vmem:[%s2347_s3 + $0xd8] ss:$12 sps:$4 sm:$0xff]  }
  0x10   :  { %v1707_v57 = vld [vmem:[%s2347_s3 + $0xf4] ss:$12 sps:$4 sm:$0xff]   ;;  %v1705_v58 = vld [vmem:[%s2347_s3 + $0xf0] ss:$12 sps:$4 sm:$0xff]   ;;  %v1712_v59 = vld [vmem:[%s2347_s3 + $0x10c] ss:$12 sps:$4 sm:$0xff]  }
  0x11   :  { %v1710_v60 = vld [vmem:[%s2347_s3 + $0x108] ss:$12 sps:$4 sm:$0xff]   ;;  %v1717_v61 = vld [vmem:[%s2347_s3 + $0x124] ss:$12 sps:$4 sm:$0xff]   ;;  %v1715_v62 = vld [vmem:[%s2347_s3 + $0x120] ss:$12 sps:$4 sm:$0xff]  }
  0x12   :  { %914 = vmatpush1.bf16.msra.mxu0 %v1674_v28  ;;  %1554 = vmatpush3.bf16.msra.mxu1 %v1704_v35  ;;  %v1722_v63 = vld [vmem:[%s2347_s3 + $0x13c] ss:$12 sps:$4 sm:$0xff]   ;;  %v1720_v0 = vld [vmem:[%s2347_s3 + $0x138] ss:$12 sps:$4 sm:$0xff]   ;;  %v1727_v1 = vld [vmem:[%s2347_s3 + $0x154] ss:$12 sps:$4 sm:$0xff]  }
  0x13   :  { %915 = vmatprep.subr.bf16.mxu0 %v1679_v29  ;;  %1555 = vmatprep.subr.bf16.mxu1 %v1708_v38  ;;  %v1728_v2 = vld [vmem:[%s2347_s3 + $0x158] ss:$12 sps:$4 sm:$0xff]   ;;  %v1725_v3 = vld [vmem:[%s2347_s3 + $0x150] ss:$12 sps:$4 sm:$0xff]   ;;  %v1730_v7 = vld [vmem:[%s2347_s3 + $0x168] ss:$12 sps:$4 sm:$0xff]  }
  0x14   :  { %v1729_v4 = vld [vmem:[%s2347_s3 + $0x98] ss:$12 sps:$4 sm:$0xff]   ;;  %v1733_v6 = vld [vmem:[%s2347_s3 + $0x170] ss:$12 sps:$4 sm:$0xff]   ;;  %v1738_v11 = vld [vmem:[%s2347_s3 + $0x248] ss:$12 sps:$4 sm:$0xff]  }
  0x15   :  { %v1732_v5 = vld [vmem:[%s2347_s3 + $0x16c] ss:$12 sps:$4 sm:$0xff]   ;;  %v1734_v8 = vld [vmem:[%s2347_s3 + $0xb0] ss:$12 sps:$4 sm:$0xff]   ;;  %v44_v12 = vsub.s32 0, %v1923_v10  ;;  %v48_v14 = vsub.s32 1, %v1923_v10 }
  0x16   :  { %916 = vmatpush1.bf16.msra.mxu0 %v1677_v32  ;;  %1556 = vmatpush3.bf16.msra.mxu1 %v1709_v39  ;;  %v1737_v9 = vld [vmem:[%s2347_s3 + $0x184] ss:$12 sps:$4 sm:$0xff]   ;;  %v2092_v13 = vld [vmem:[%s2346_s2] sm:$0xf]  ;;  %v56_v15 = vsub.s32 3, %v1923_v10 }
  0x17   :  { %917 = vmatprep.subr.bf16.mxu0 %v1682_v33  ;;  %1557 = vmatprep.subr.bf16.mxu1 %v1713_v41  ;;  %v45_v16 = vrot.slane %v2092_v13, %v44_v12  ;;  %v49_v17 = vrot.slane %v2092_v13, %v48_v14  ;;  %v1735_v34 = vld [vmem:[%s2347_s3 + $0x180] ss:$12 sps:$4 sm:$0xff]   ;;  %v1739_v35 = vld [vmem:[%s2347_s3 + $0x188] ss:$12 sps:$4 sm:$0xff]  }
  0x18   :  { %v57_v18 = vrot.slane %v2092_v13, %v56_v15  ;;  %v1743_v38 = vld [vmem:[%s2347_s3 + $0x260] ss:$12 sps:$4 sm:$0xff]   ;;  %v1781_v15 = vld [vmem:[%s2347_s3 + $0x270] ss:$12 sps:$4 sm:$0xff]  }
  0x19   :  { %v1744_v41 = vld [vmem:[%s2347_s3 + $0x1a0] ss:$12 sps:$4 sm:$0xff]  }
  0x1a   :  { %918 = vmatpush1.bf16.msra.mxu0 %v1680_v36  ;;  %1558 = vmatpush3.bf16.msra.mxu1 %v1714_v42  ;;  %v1747_v42 = vld [vmem:[%s2347_s3 + $0x1b4] ss:$12 sps:$4 sm:$0xff]  }
  0x1b   :  { %919 = vmatprep.subr.bf16.mxu0 %v1685_v37  ;;  %1559 = vmatprep.subr.bf16.mxu1 %v1718_v45  ;;  %v1742_v37 = vld [vmem:[%s2347_s3 + $0x19c] ss:$12 sps:$4 sm:$0xff]   ;;  %v1749_v45 = vld [vmem:[%s2347_s3 + $0x1b8] ss:$12 sps:$4 sm:$0xff]  }
  0x1e   :  { %920 = vmatpush1.bf16.msra.mxu0 %v1683_v40  ;;  %1560 = vmatpush3.bf16.msra.mxu1 %v1719_v46  ;;  %v1740_v40 = vld [vmem:[%s2347_s3 + $0x198] ss:$12 sps:$4 sm:$0xff]  }
  0x1f   :  { %921 = vmatprep.subr.bf16.mxu0 %v1688_v43  ;;  %1561 = vmatprep.subr.bf16.mxu1 %v1723_v49  ;;  %v1748_v43 = vld [vmem:[%s2347_s3 + $0x278] ss:$12 sps:$4 sm:$0xff]   ;;  %v1754_v49 = vld [vmem:[%s2347_s3 + $0x1d0] ss:$12 sps:$4 sm:$0xff]  }
  0x20   :  { %v1752_v46 = vld [vmem:[%s2347_s3 + $0x1cc] ss:$12 sps:$4 sm:$0xff]  }
  0x22   :  { %922 = vmatpush1.bf16.msra.mxu0 %v1686_v44  ;;  %1562 = vmatpush3.bf16.msra.mxu1 %v1724_v51  ;;  %v1745_v44 = vld [vmem:[%s2347_s3 + $0x1b0] ss:$12 sps:$4 sm:$0xff]   ;;  %v1758_v51 = vld [vmem:[%s2347_s3 + $0x2a8] ss:$12 sps:$4 sm:$0xff]  }
  0x23   :  { %923 = vmatprep.subr.bf16.mxu0 %v1691_v47  ;;  %1563 = vmatprep.subr.bf16.mxu1 %v1728_v2  ;;  %v1753_v47 = vld [vmem:[%s2347_s3 + $0x290] ss:$12 sps:$4 sm:$0xff]  }
  0x24   :  { %v1773_v2 = vld [vmem:[%s2347_s3 + $0x2f0] ss:$12 sps:$4 sm:$0xff]  }
  0x26   :  { %924 = vmatpush1.bf16.msra.mxu0 %v1689_v48  ;;  %1564 = vmatpush3.bf16.msra.mxu1 %v1729_v4  ;;  %v1750_v48 = vld [vmem:[%s2347_s3 + $0x1c8] ss:$12 sps:$4 sm:$0xff]  }
  0x27   :  { %925 = vmatprep.subr.bf16.mxu0 %v1694_v50  ;;  %1565 = vmatprep.subr.bf16.mxu1 %v1733_v6  ;;  %v1757_v50 = vld [vmem:[%s2347_s3 + $0x1e4] ss:$12 sps:$4 sm:$0xff]   ;;  %v1770_v4 = vld [vmem:[%s2347_s3 + $0x228] ss:$12 sps:$4 sm:$0xff]  }
  0x28   :  { %v1777_v6 = vld [vmem:[%s2347_s3 + $0x244] ss:$12 sps:$4 sm:$0xff]  }
  0x2a   :  { %926 = vmatpush1.bf16.msra.mxu0 %v1692_v52  ;;  %1566 = vmatpush3.bf16.msra.mxu1 %v1734_v8  ;;  %v52_v52 = vsub.s32 2, %v1923_v10  ;;  %v1775_v8 = vld [vmem:[%s2347_s3 + $0x240] ss:$12 sps:$4 sm:$0xff]  }
  0x2b   :  { %927 = vmatprep.subr.bf16.mxu0 %v1697_v53  ;;  %1573 = vmatprep.subr.bf16.mxu1 %v1738_v11  ;;  %v1755_v53 = vld [vmem:[%s2347_s3 + $0x1e0] ss:$12 sps:$4 sm:$0xff]   ;;  %v1778_v11 = vld [vmem:[%s2347_s3 + $0x258] ss:$12 sps:$4 sm:$0xff]  }
  0x2c   :  { %v1816_v10 = vld [vmem:[%s2349_s5 + $0x88] sm:$0xff]  }
  0x2e   :  { %928 = vmatpush1.bf16.msra.mxu0 %v1695_v54  ;;  %v1759_v54 = vld [vmem:[%s2347_s3 + $0x1e8] ss:$12 sps:$4 sm:$0xff]  }
  0x2f   :  { %929 = vmatprep.subr.bf16.mxu0 %v1702_v55  ;;  %v1762_v55 = vld [vmem:[%s2347_s3 + $0x1fc] ss:$12 sps:$4 sm:$0xff]  }
  0x32   :  { %930 = vmatpush1.bf16.msra.mxu0 %v1700_v56  ;;  %v1763_v56 = vld [vmem:[%s2347_s3 + $0x2c0] ss:$12 sps:$4 sm:$0xff]  }
  0x33   :  { %931 = vmatprep.subr.bf16.mxu0 %v1707_v57  ;;  %v53_v57 = vrot.slane %v2092_v13, %v52_v52  ;;  %v1783_v13 = vld [vmem:[%s2347_s3 + $0x274] ss:$12 sps:$4 sm:$0xff]  }
  0x36   :  { %932 = vmatpush1.bf16.msra.mxu0 %v1705_v58  ;;  %v1760_v58 = vld [vmem:[%s2347_s3 + $0x1f8] ss:$12 sps:$4 sm:$0xff]  }
  0x37   :  { %933 = vmatprep.subr.bf16.mxu0 %v1712_v59  ;;  %v1764_v59 = vld [vmem:[%s2347_s3 + $0x200] ss:$12 sps:$4 sm:$0xff]  }
  0x3a   :  { %934 = vmatpush1.bf16.msra.mxu0 %v1710_v60  ;;  %v1767_v60 = vld [vmem:[%s2347_s3 + $0x214] ss:$12 sps:$4 sm:$0xff]  }
  0x3b   :  { %935 = vmatprep.subr.bf16.mxu0 %v1717_v61  ;;  %v1768_v61 = vld [vmem:[%s2347_s3 + $0x2d8] ss:$12 sps:$4 sm:$0xff]  }
  0x3e   :  { %936 = vmatpush1.bf16.msra.mxu0 %v1715_v62 }
  0x3f   :  { %937 = vmatprep.subr.bf16.mxu0 %v1722_v63  ;;  %v1765_v63 = vld [vmem:[%s2347_s3 + $0x210] ss:$12 sps:$4 sm:$0xff]  }
  0x42   :  { %938 = vmatpush1.bf16.msra.mxu0 %v1720_v0  ;;  %v1769_v0 = vld [vmem:[%s2347_s3 + $0x218] ss:$12 sps:$4 sm:$0xff]  }
  0x43   :  { %939 = vmatprep.subr.bf16.mxu0 %v1727_v1  ;;  %v1772_v1 = vld [vmem:[%s2347_s3 + $0x22c] ss:$12 sps:$4 sm:$0xff]  }
  0x46   :  { %940 = vmatpush1.bf16.msra.mxu0 %v1725_v3 }
  0x47   :  { %941 = vmatprep.subr.bf16.mxu0 %v1732_v5  ;;  %v1774_v5 = vld [vmem:[%s2347_s3 + $0x230] ss:$12 sps:$4 sm:$0xff]  }
  0x4a   :  { %942 = vmatpush1.bf16.msra.mxu0 %v1730_v7 }
  0x4b   :  { %952 = vmatprep.subr.bf16.mxu0 %v1737_v9  ;;  %v1780_v9 = vld [vmem:[%s2347_s3 + $0x25c] ss:$12 sps:$4 sm:$0xff]  }
  0xe0   :  { %v168_v19 = vpop.f32.mrb[0].mxu0  ;;  %v2103_v20 = vpop.f32.mrb[0].mxu1 }
  0xe1   :  { %v169_v21 = vadd.f32 %v168_v19, %v45_v16  ;;  %v170_v22 = vpop.f32.mrb[1].mxu0  ;;  %v211_v23 = vpop.f32.mrb[1].mxu1  ;;  %v210_v62 = vadd.f32 %v2103_v20, %v53_v57  ;;  %v1786_v16 = vld [vmem:[%s2347_s3 + $0x28c] ss:$12 sps:$4 sm:$0xff]   ;;  %v1792_v20 = vld [vmem:[%s2347_s3 + $0x2bc] ss:$12 sps:$4 sm:$0xff]  }
  0xe2   :  { %v171_v24 = vadd.f32 %v170_v22, %v49_v17  ;;  %v172_v25 = vpop.f32.mrb[2].mxu0  ;;  %v212_v26 = vadd.f32 %v211_v23, %v57_v18  ;;  %v213_v27 = vpop.f32.mrb[2].mxu1  ;;  %v1784_v17 = vld [vmem:[%s2347_s3 + $0x288] ss:$12 sps:$4 sm:$0xff]   ;;  %v1789_v18 = vld [vmem:[%s2347_s3 + $0x2a4] ss:$12 sps:$4 sm:$0xff]  }
  0xe3   :  { %v216_v28 = vmax.f32 %v169_v21, 0.0  ;;  %v173_v29 = vpop.f32.mrb[3].mxu0  ;;  %v214_v30 = vpop.f32.mrb[3].mxu1  ;;  %v218_v3 = vmax.f32 %v210_v62, 0.0  ;;  %v1787_v19 = vld [vmem:[%s2347_s3 + $0x2a0] ss:$12 sps:$4 sm:$0xff]  }
  0xe4   :  { %v217_v31 = vmax.f32 %v171_v24, 0.0  ;;  %v219_v32 = vmax.f32 %v212_v26, 0.0  ;;  %v1790_v21 = vld [vmem:[%s2347_s3 + $0x2b8] ss:$12 sps:$4 sm:$0xff]   ;;  %v1795_v22 = vld [vmem:[%s2347_s3 + $0x2d4] ss:$12 sps:$4 sm:$0xff]  }
  0xe5   :  { %v1547_v36 = vpack.c.bf16 %v216_v28, %v216_v28  ;;  %v1549_v7 = vpack.c.bf16 %v218_v3, %v218_v3  ;;  %v1793_v23 = vld [vmem:[%s2347_s3 + $0x2d0] ss:$12 sps:$4 sm:$0xff]   ;;  %v1798_v24 = vld [vmem:[%s2347_s3 + $0x2ec] ss:$12 sps:$4 sm:$0xff]   ;;  %v1796_v25 = vld [vmem:[%s2347_s3 + $0x2e8] ss:$12 sps:$4 sm:$0xff]  }
  0xe6   :  { %v1548_v33 = vpack.c.bf16 %v217_v31, %v217_v31  ;;  %v1550_v39 = vpack.c.bf16 %v219_v32, %v219_v32  ;;  %v1799_v26 = vld [vmem:[%s2349_s5 + $0x40] sm:$0xff]   ;;  %v1801_v28 = vld [vmem:[%s2349_s5 + $0x48] sm:$0xff]   ;;  %v1803_v30 = vld [vmem:[%s2349_s5 + $0x50] sm:$0xff]  }
  0xe7   :  { %v1800_v27 = vld [vmem:[%s2349_s5] sm:$0xff]   ;;  %v1802_v29 = vld [vmem:[%s2349_s5 + $0x8] sm:$0xff]   ;;  %v1804_v31 = vld [vmem:[%s2349_s5 + $0x10] sm:$0xff]  }
  0xe8   :  { %943 = vmatprep.mubr.bf16.mxu0 %v1548_v33  ;;  %1025 = vmatprep.mubr.bf16.mxu1 %v1548_v33  ;;  %v1805_v32 = vld [vmem:[%s2349_s5 + $0x58] sm:$0xff]  }
  0xe9   :  { %944 = vmatmul.mubr.bf16.vlgmr.msra.gmra.mrb[4].mxu0 %v1547_v36  ;;  %1026 = vmatmul.mubr.bf16.vlgmr.msra.gmra.mrb[4].mxu1 %v1547_v36  ;;  %v1806_v33 = vld [vmem:[%s2349_s5 + $0x18] sm:$0xff]   ;;  %v1809_v36 = vld [vmem:[%s2349_s5 + $0x68] sm:$0xff]  }
  0xea   :  { %953 = vmatpush1.bf16.msra.mxu0 %v1735_v34  ;;  %1574 = vmatpush3.bf16.msra.mxu1 %v1739_v35  ;;  %v1807_v34 = vld [vmem:[%s2349_s5 + $0x60] sm:$0xff]  }
  0xeb   :  { %954 = vmatprep.subr.bf16.mxu0 %v1742_v37  ;;  %1575 = vmatprep.subr.bf16.mxu1 %v1743_v38  ;;  %v1808_v35 = vld [vmem:[%s2349_s5 + $0x20] sm:$0xff]   ;;  %v1810_v37 = vld [vmem:[%s2349_s5 + $0x28] sm:$0xff]   ;;  %v1811_v38 = vld [vmem:[%s2349_s5 + $0x70] sm:$0xff]  }
  0xec   :  { %1065 = vmatprep.mubr.bf16.mxu1 %v1550_v39  ;;  %984 = vmatprep.mubr.bf16.mxu0 %v1550_v39  ;;  %v1812_v39 = vld [vmem:[%s2349_s5 + $0x30] sm:$0xff]  }
  0xee   :  { %955 = vmatpush1.bf16.msra.mxu0 %v1740_v40  ;;  %1576 = vmatpush3.bf16.msra.mxu1 %v1744_v41  ;;  %v1813_v40 = vld [vmem:[%s2349_s5 + $0x78] sm:$0xff]  }
  0xef   :  { %956 = vmatprep.subr.bf16.mxu0 %v1747_v42  ;;  %1577 = vmatprep.subr.bf16.mxu1 %v1748_v43  ;;  %v1814_v41 = vld [vmem:[%s2349_s5 + $0x38] sm:$0xff]   ;;  %v1854_v42 = vmov 0.0  }
  0xf2   :  { %957 = vmatpush1.bf16.msra.mxu0 %v1745_v44  ;;  %1578 = vmatpush3.bf16.msra.mxu1 %v1749_v45 }
  0xf3   :  { %958 = vmatprep.subr.bf16.mxu0 %v1752_v46  ;;  %1579 = vmatprep.subr.bf16.mxu1 %v1753_v47 }
  0xf6   :  { %959 = vmatpush1.bf16.msra.mxu0 %v1750_v48  ;;  %1580 = vmatpush3.bf16.msra.mxu1 %v1754_v49  ;;  %v368_v48 = vld [vmem:[%s2348_s4] sm:$0x7] }
  0xf7   :  { %960 = vmatprep.subr.bf16.mxu0 %v1757_v50  ;;  %1581 = vmatprep.subr.bf16.mxu1 %v1758_v51  ;;  %v381_v49 = vrot.slane %v368_v48, %v52_v52 }
  0xfa   :  { %961 = vmatpush1.bf16.msra.mxu0 %v1755_v53  ;;  %1582 = vmatpush3.bf16.msra.mxu1 %v1759_v54 }
  0xfb   :  { %962 = vmatprep.subr.bf16.mxu0 %v1762_v55  ;;  %1583 = vmatprep.subr.bf16.mxu1 %v1763_v56 }
  0xfe   :  { %963 = vmatpush1.bf16.msra.mxu0 %v1760_v58  ;;  %1584 = vmatpush3.bf16.msra.mxu1 %v1764_v59 }
  0xff   :  { %964 = vmatprep.subr.bf16.mxu0 %v1767_v60  ;;  %1585 = vmatprep.subr.bf16.mxu1 %v1768_v61  ;;  %v373_v60 = vrot.slane %v368_v48, %v44_v12  ;;  %v377_v61 = vrot.slane %v368_v48, %v48_v14  ;;  %v1817_v12 = vld [vmem:[%s2349_s5 + $0x90] sm:$0xff]   ;;  %v1818_v14 = vld [vmem:[%s2349_s5 + $0x98] sm:$0xff]  }
 0x102   :  { %965 = vmatpush1.bf16.msra.mxu0 %v1765_v63  ;;  %1586 = vmatpush3.bf16.msra.mxu1 %v1769_v0 }
 0x103   :  { %966 = vmatprep.subr.bf16.mxu0 %v1772_v1  ;;  %1587 = vmatprep.subr.bf16.mxu1 %v1773_v2 }
 0x106   :  { %967 = vmatpush1.bf16.msra.mxu0 %v1770_v4  ;;  %1588 = vmatpush3.bf16.msra.mxu1 %v1774_v5 }
 0x107   :  { %968 = vmatprep.subr.bf16.mxu0 %v1777_v6  ;;  %1595 = vmatprep.subr.bf16.mxu1 %v1799_v26 }
 0x109   :  { %1066 = vmatmul.mubr.bf16.vlgmr.msra.gmra.mrb[8].mxu1 %v1549_v7 }
 0x10a   :  { %969 = vmatpush1.bf16.msra.mxu0 %v1775_v8  ;;  %1596 = vmatpush3.bf16.msra.mxu1 %v1800_v27  ;;  %v1819_v8 = vld [vmem:[%s2349_s5 + $0xa0] sm:$0xff]  }
 0x10b   :  { %970 = vmatprep.subr.bf16.mxu0 %v1780_v9  ;;  %1597 = vmatprep.subr.bf16.mxu1 %v1801_v28  ;;  %v1820_v9 = vld [vmem:[%s2349_s5 + $0xa8] sm:$0xff]  }
 0x10e   :  { %971 = vmatpush1.bf16.msra.mxu0 %v1778_v11  ;;  %1598 = vmatpush3.bf16.msra.mxu1 %v1802_v29  ;;  %v1821_v11 = vld [vmem:[%s2349_s5 + $0xb0] sm:$0xff]  }
 0x10f   :  { %972 = vmatprep.subr.bf16.mxu0 %v1783_v13  ;;  %1599 = vmatprep.subr.bf16.mxu1 %v1803_v30  ;;  %v1822_v13 = vld [vmem:[%s2349_s5 + $0xb8] sm:$0xff]  }
 0x112   :  { %973 = vmatpush1.bf16.msra.mxu0 %v1781_v15  ;;  %1600 = vmatpush3.bf16.msra.mxu1 %v1804_v31 }
 0x113   :  { %974 = vmatprep.subr.bf16.mxu0 %v1786_v16  ;;  %1601 = vmatprep.subr.bf16.mxu1 %v1805_v32 }
 0x116   :  { %975 = vmatpush1.bf16.msra.mxu0 %v1784_v17  ;;  %1602 = vmatpush3.bf16.msra.mxu1 %v1806_v33 }
 0x117   :  { %976 = vmatprep.subr.bf16.mxu0 %v1789_v18  ;;  %1603 = vmatprep.subr.bf16.mxu1 %v1807_v34 }
 0x11a   :  { %977 = vmatpush1.bf16.msra.mxu0 %v1787_v19  ;;  %1604 = vmatpush3.bf16.msra.mxu1 %v1808_v35 }
 0x11b   :  { %978 = vmatprep.subr.bf16.mxu0 %v1792_v20  ;;  %1605 = vmatprep.subr.bf16.mxu1 %v1809_v36 }
 0x11e   :  { %979 = vmatpush1.bf16.msra.mxu0 %v1790_v21  ;;  %1606 = vmatpush3.bf16.msra.mxu1 %v1810_v37  ;;  %v1515_v21 = vld [vmem:[%s2350_s6] ss:$0 sm:$0xff] }
 0x11f   :  { %980 = vmatprep.subr.bf16.mxu0 %v1795_v22  ;;  %1607 = vmatprep.subr.bf16.mxu1 %v1811_v38 }
 0x122   :  { %981 = vmatpush1.bf16.msra.mxu0 %v1793_v23  ;;  %1608 = vmatpush3.bf16.msra.mxu1 %v1812_v39 }
 0x123   :  { %982 = vmatprep.subr.bf16.mxu0 %v1798_v24  ;;  %1609 = vmatprep.subr.bf16.mxu1 %v1813_v40 }
 0x126   :  { %983 = vmatpush1.bf16.msra.mxu0 %v1796_v25  ;;  %1610 = vmatpush3.bf16.msra.mxu1 %v1814_v41 }
 0x127   :  { %1626 = vmatprep.subr.bf16.mxu1 %v1854_v42 }
 0x129   :  { %985 = vmatmul.mubr.bf16.vlgmr.msra.gmra.mrb[4].mxu0 %v1549_v7  ;;  %v1815_v7 = vld [vmem:[%s2349_s5 + $0x80] sm:$0xff]  }
 0x1bc   :  { %v1567_v43 = vpop.f32.mrb[4].mxu1 }
 0x1bd   :  { %v1568_v44 = vpop.f32.mrb[5].mxu1 }
 0x1be   :  { %v1569_v45 = vadd.f32 %v1568_v44, %v1567_v43  ;;  %v1570_v46 = vpop.f32.mrb[6].mxu1 }
 0x1bf   :  { %v1571_v47 = vpop.f32.mrb[7].mxu1 }
 0x1c0   :  { %v1028_v53 = vadd.f32 %v1569_v45, %v381_v49 }
 0x1dc   :  { %v1589_v50 = vpop.f32.mrb[8].mxu1 }
 0x1dd   :  { %v1590_v51 = vpop.f32.mrb[9].mxu1 }
 0x1de   :  { %v1591_v54 = vadd.f32 %v1590_v51, %v1589_v50  ;;  %v1592_v55 = vpop.f32.mrb[10].mxu1 }
 0x1df   :  { %v1593_v56 = vpop.f32.mrb[11].mxu1 }
 0x1e0   :  { %v1068_v57 = vadd.f32 %v1591_v54, %v1028_v53 }
 0x1e2   :  { %v1075_v58 = vmax.f32 %v1068_v57, 0.0 }
 0x1e4   :  { %v1546_v59 = vpack.c.bf16 %v1075_v58, %v1075_v58 }
 0x1e6   :  { %1090 = vst [vmem:[#allocation3 + $0x8] sm:$0xf] %v1546_v59 }
 0x1ed   :  { %v1823_v15 = vld [vmem:[#allocation3 + $0x8] ss:$0 sps:$4 sm:$0xff]  }
 0x1fc   :  { %v986_v62 = vpop.f32.mrb[4].mxu0 }
 0x1fd   :  { %v1646_v63 = vadd.f32 %v986_v62, %v373_v60  ;;  %v988_v0 = vpop.f32.mrb[5].mxu0 }
 0x1fe   :  { %v1647_v52 = vadd.f32 %v988_v0, %v377_v61  ;;  %v990_v1 = vpop.f32.mrb[6].mxu0 }
 0x1ff   :  { %v1073_v2 = vmax.f32 %v1646_v63, 0.0  ;;  %v991_v3 = vpop.f32.mrb[7].mxu0 }
 0x200   :  { %v1074_v4 = vmax.f32 %v1647_v52, 0.0 }
 0x201   :  { %v1826_v5 = vpack.c.bf16 %v1073_v2, %v1073_v2 }
 0x202   :  { %v1827_v6 = vpack.c.bf16 %v1074_v4, %v1074_v4 }
 0x204   :  { %1335 = vmatprep.mubr.bf16.mxu1 %v1827_v6 }
 0x205   :  { %1336 = vmatmul.mubr.bf16.vlgmr.msra.gmra.mrb[12].mxu1 %v1826_v5 }
 0x206   :  { %1627 = vmatpush3.bf16.msra.mxu1 %v1815_v7  ;;  %1642 = vmatprep.mubr.msk.bf16.mxu1 %vm1855_vm1, %v1854_v42 }
 0x207   :  { %1628 = vmatprep.subr.bf16.mxu1 %v1854_v42 }
 0x20a   :  { %1629 = vmatpush3.bf16.msra.mxu1 %v1816_v10 }
 0x20b   :  { %1630 = vmatprep.subr.bf16.mxu1 %v1854_v42 }
 0x20e   :  { %1631 = vmatpush3.bf16.msra.mxu1 %v1817_v12 }
 0x20f   :  { %1632 = vmatprep.subr.bf16.mxu1 %v1854_v42 }
 0x212   :  { %1633 = vmatpush3.bf16.msra.mxu1 %v1818_v14 }
 0x213   :  { %1634 = vmatprep.subr.bf16.mxu1 %v1854_v42 }
 0x216   :  { %1635 = vmatpush3.bf16.msra.mxu1 %v1819_v8 }
 0x217   :  { %1636 = vmatprep.subr.bf16.mxu1 %v1854_v42 }
 0x21a   :  { %1637 = vmatpush3.bf16.msra.mxu1 %v1820_v9 }
 0x21b   :  { %1638 = vmatprep.subr.bf16.mxu1 %v1854_v42 }
 0x21e   :  { %1639 = vmatpush3.bf16.msra.mxu1 %v1821_v11 }
 0x21f   :  { %1640 = vmatprep.subr.bf16.mxu1 %v1854_v42 }
 0x222   :  { %1641 = vmatpush3.bf16.msra.mxu1 %v1822_v13 }
 0x225   :  { %1643 = vmatmul.mubr.bf16.vlgmr.msra.gmra.mrb[16].mxu1 %v1823_v15 }
 0x2d8   :  { %v1611_v16 = vpop.f32.mrb[12].mxu1 }
 0x2d9   :  { %v1612_v17 = vpop.f32.mrb[13].mxu1 }
 0x2da   :  { %v1613_v18 = vadd.f32 %v1612_v17, %v1611_v16  ;;  %v1614_v19 = vpop.f32.mrb[14].mxu1 }
 0x2db   :  { %v1615_v20 = vpop.f32.mrb[15].mxu1 }
 0x2dc   :  { %v1338_v22 = vadd.f32 %v1613_v18, %v1515_v21 }
 0x2f8   :  { %v1377_v23 = vpop.f32.mrb[16].mxu1 }
 0x2f9   :  { %v1378_v24 = vadd.f32 %v1377_v23, %v1338_v22  ;;  %v1644_v25 = vpop.f32.mrb[17].mxu1 }
 0x2fa   :  { %v1380_v26 = vpop.f32.mrb[18].mxu1 }
 0x2fb   :  { %1824 = vtanh.f32 %v1378_v24  ;;  %v1645_v27 = vpop.f32.mrb[19].mxu1 }
 0x305   :  { %v1825_v28 = vpop.eup %1824 }
 0x306   :  { %1384 = vst [vmem:[#allocation4] sm:$0xff] %v1825_v28 }
 0x307   :  { %1389 = vsyncadd [#allocation5], 96  ;;  %s1856_s5 = smov [#allocation4]  }
 0x308   :  { %s1390_s12 = sshll.u32 %s1856_s5, 4  ;;  %s1391_s12 = int_to_ptr.vmem [resolvable:$true] %s1390_s12 }
 0x309   :  { %s1828_s13 = scalar_lea.vmem %s1391_s12, 32  ;;  %s1832_s14 = scalar_lea.vmem %s1391_s12, 128 }
 0x30a   :  { %p1829_p0 = scmp.ne.s32.totalorder %s1391_s12, %s1828_s13  ;;  %p1833_p1 = scmp.lt.s32.totalorder %s1391_s12, %s1391_s12 }
 0x30b   :  { %p1834_p2 = scmp.lt.s32.totalorder %s1832_s14, %s1828_s13 }
 0x30d   :  { %p1835_p3 = por %p1834_p2, %p1833_p1 }
 0x30f   :  { %p1836_p4 = pnand %p1835_p3, %p1829_p0 }
 0x311   :  { %1839 = shalt.err (!%p1836_p4)
}
 0x312   :  { %s1840_s16 = scalar_lea.hbm %s2351_s7, 32 }
 0x313   :  { %p1841_p5 = scmp.ne.s32.totalorder %s2351_s7, %s1840_s16  ;;  %p1844_p6 = scmp.lt.u32.totalorder %s1840_s16, %s2351_s7 }
 0x315   :  { %p1846_p7 = pnand %p1844_p6, %p1841_p5 }
 0x317   :  { %1849 = shalt.err (!%p1846_p7)
}
 0x318   :  { %s1857_s21 = smov 32   ;;  %s1858_s4 = smov 2  }
 0x319   :  { %1396 = dma.vmem_to_hbm [thread:$0]  %s1391_s12, 32, %s2351_s7, [#allocation5], %s1857_s21, %s1857_s21, %s1858_s4  }
 0x31a   :  { %1850 = dma.done.wait [#allocation5], 128  }
 0x31b   :  { %1851 = vsyncadd [#allocation5], 4294967168 }
 0x31c   :  { %1400 = vsyncpa [#allocation5], 1 }

</bundles_post_ra>
